<compile_context>
chip_gen: v7x
topology: tpu7x:2x2x1
jax: 0.10.0
libtpu: 0.0.40
codegen_flags: <defaults>
</compile_context>

<pallas_src>
import functools

import jax
import jax.numpy as jnp
from jax.experimental import pallas as pl
from jax.experimental.pallas import tpu as pltpu


_LANE = 128      # feature dims padded to lane multiples -> unmasked full-lane vst
_SUBLANE = 16    # batch tiles kept multiples of 16 (bf16 sublane packing)
_MIB = 2 ** 20


def _round_up(x, m):
    return (x + m - 1) // m * m


def _pad_axis(a, axis, target):
    pad = target - a.shape[axis]
    if pad == 0:
        return a
    widths = [(0, 0)] * a.ndim
    widths[axis] = (0, pad)
    return jnp.pad(a, widths)


def _vmem_capacity_bytes():
    """Per-core physical VMEM (generation-aware); conservative fallback."""
    try:
        cap = int(pltpu.get_tpu_info().vmem_capacity_bytes)
        if cap > 0:
            return cap
    except Exception:
        pass
    return 64 * _MIB  # v7x per-TensorCore VMEM (smallest of v5e/v6e/v7x)


@functools.cache
def _single_buffer_ok():
    """Probe (compile-only) whether pipeline_mode=pl.Buffered(1) lowers here."""
    def _copy(x_ref, o_ref):
        o_ref[...] = x_ref[...]
    try:
        fn = pl.pallas_call(
            _copy,
            out_shape=jax.ShapeDtypeStruct((16, 128), jnp.float32),
            grid=(2,),
            in_specs=[pl.BlockSpec((8, 128), lambda i: (0, 0),
                                   pipeline_mode=pl.Buffered(1))],
            out_specs=pl.BlockSpec((8, 128), lambda i: (i, 0)),
        )
        jax.jit(fn).lower(jax.ShapeDtypeStruct((8, 128), jnp.float32)).compile()
        return True
    except Exception:
        return False


def _const_spec(block_shape, index_map):
    """BlockSpec for an operand whose block index never changes: single-buffer it."""
    if _single_buffer_ok():
        return pl.BlockSpec(block_shape, index_map, pipeline_mode=pl.Buffered(1))
    return pl.BlockSpec(block_shape, index_map)


def _choose_tm(B, tm_cap):
    """Batch tile: multiple of _SUBLANE, >=2 grid steps when B allows (v7x
    megacore), capped by tm_cap, with <=12.5% batch-padding waste if possible."""
    if B <= _SUBLANE:
        return _SUBLANE
    two_tile_cap = _round_up(pl.cdiv(B, 2), _SUBLANE)  # guarantees >= 2 tiles
    cap = max(_SUBLANE, min(tm_cap, two_tile_cap))
    for tm in sorted({512, 256, 128, 64, 32, 16, cap}, reverse=True):
        if tm > cap:
            continue
        waste = (_round_up(B, tm) - B) / B
        if waste <= 0.125:
            return tm
    return _SUBLANE


def _mlp_kernel_resident(*refs, n_hidden):
    """All weights VMEM-resident; hidden layers statically unrolled.

    relu(x @ W_in + b_in) -> n_hidden x relu(h @ W_h + b_h) -> h @ W_out + b_out.
    Activation lives in a bf16 VMEM scratch; matmuls are bf16 MXU ops with f32
    accumulation; bias/ReLU epilogue stays in f32 on the accumulator.
    """
    if n_hidden > 0:
        (x_ref, w_in_ref, b_in_ref, w_hid_ref, b_hid_ref,
         w_out_ref, b_out_ref, o_ref, h_ref) = refs
    else:
        (x_ref, w_in_ref, b_in_ref, w_out_ref, b_out_ref, o_ref, h_ref) = refs
        w_hid_ref = b_hid_ref = None

    h = jnp.dot(x_ref[...], w_in_ref[...], preferred_element_type=jnp.float32)
    h_ref[...] = jnp.maximum(h + b_in_ref[...], 0.0).astype(h_ref.dtype)

    for l in range(n_hidden):  # static unroll
        h = jnp.dot(h_ref[...], w_hid_ref[l], preferred_element_type=jnp.float32)
        h_ref[...] = jnp.maximum(h + b_hid_ref[l], 0.0).astype(h_ref.dtype)

    o = jnp.dot(h_ref[...], w_out_ref[...], preferred_element_type=jnp.float32)
    o_ref[...] = (o + b_out_ref[...]).astype(o_ref.dtype)


def _mlp_kernel_streamed(x_ref, w_in_ref, b_in_ref, w_hid_ref, b_hid_ref,
                         w_out_ref, b_out_ref, o_ref, h_ref):
    """One linear layer per grid step along axis 1 (layer axis, "arbitrary").

    Hidden-layer weights arrive as (1, H, H) blocks streamed by the layer grid
    axis (layer l+1 prefetched behind layer l's matmul).  The activation stays
    resident in the bf16 VMEM scratch across the layer axis; the output tile is
    written only on the last layer step (standard accumulator/finalize pattern).
    """
    l = pl.program_id(1)
    n_l = pl.num_programs(1)  # == n_hidden + 2

    @pl.when(l == 0)
    def _():  # input layer
        h = jnp.dot(x_ref[...], w_in_ref[...], preferred_element_type=jnp.float32)
        h_ref[...] = jnp.maximum(h + b_in_ref[...], 0.0).astype(h_ref.dtype)

    @pl.when(jnp.logical_and(l > 0, l < n_l - 1))
    def _():  # hidden layer l-1 (its weights are the current streamed block)
        h = jnp.dot(h_ref[...], w_hid_ref[0], preferred_element_type=jnp.float32)
        h_ref[...] = jnp.maximum(h + b_hid_ref[0], 0.0).astype(h_ref.dtype)

    @pl.when(l == n_l - 1)
    def _():  # output layer, no ReLU
        o = jnp.dot(h_ref[...], w_out_ref[...], preferred_element_type=jnp.float32)
        o_ref[...] = (o + b_out_ref[...]).astype(o_ref.dtype)


def mlp_forward(x, params, *, out_dtype=jnp.float32, force_stream=False):
    """Fused MLP forward. x: [B, Din] float; returns [B, Dout] out_dtype."""
    w_in, b_in, w_hid, b_hid, w_out, b_out = params
    cdt = w_in.dtype                      # MXU operand dtype (bf16)
    bpe = jnp.dtype(cdt).itemsize
    out_bpe = jnp.dtype(out_dtype).itemsize
    B, Din = x.shape
    H = w_in.shape[1]
    Dout = w_out.shape[1]
    n_hidden = 0 if w_hid is None else w_hid.shape[0]

    # Lane-dense padding of feature dims.
    Din_p, H_p, Dout_p = (_round_up(d, _LANE) for d in (Din, H, Dout))

    # Generation-aware VMEM budget: ~56 MiB on v7x, ~112 MiB on v5e/v6e.
    budget = _vmem_capacity_bytes() * 7 // 8
    tm_cap = 512 if budget > 100 * _MIB else 256
    TM = _choose_tm(B, tm_cap)

    wt_buf = 1 if _single_buffer_ok() else 2  # buffers per constant-index weight

    def _ests(tm):
        tile = (2 * tm * Din_p * bpe          # double-buffered x tile
                + 2 * tm * Dout_p * out_bpe   # double-buffered output tile
                + tm * H_p * bpe)             # persistent bf16 activation scratch
        fixed_w = wt_buf * (Din_p * H_p + H_p * Dout_p + H_p + Dout_p) * bpe
        hid_all = wt_buf * n_hidden * (H_p * H_p + H_p) * bpe
        hid_strm = min(2, max(n_hidden, 1)) * (H_p * H_p + H_p) * bpe
        return tile + fixed_w + hid_all, tile + fixed_w + hid_strm

    res_est, strm_est = _ests(TM)
    stream = n_hidden > 0 and (force_stream or res_est > budget)
    while TM > _SUBLANE and (strm_est if stream else res_est) > budget:
        TM = max(_SUBLANE, _round_up(TM // 2, _SUBLANE))
        res_est, strm_est = _ests(TM)
        if not force_stream:
            stream = n_hidden > 0 and res_est > budget
    est = strm_est if stream else res_est
    if est > budget:
        # TODO(synk): add per-layer K/N tiling for feature dims whose single
        # layer's weights exceed the per-generation VMEM budget.
        raise ValueError(f"MLP layer too large for VMEM plan: {est} > {budget} bytes")

    B_p = _round_up(B, TM)
    x_p = _pad_axis(_pad_axis(x.astype(cdt), 1, Din_p), 0, B_p)
    w_in_p = _pad_axis(_pad_axis(w_in, 0, Din_p), 1, H_p)
    b_in_p = _pad_axis(b_in, 1, H_p)
    w_out_p = _pad_axis(_pad_axis(w_out, 0, H_p), 1, Dout_p)
    b_out_p = _pad_axis(b_out, 1, Dout_p)

    if not stream:
        grid = (B_p // TM,)
        inputs = [x_p, w_in_p, b_in_p]
        in_specs = [
            pl.BlockSpec((TM, Din_p), lambda m: (m, 0)),
            _const_spec((Din_p, H_p), lambda m: (0, 0)),
            _const_spec((1, H_p), lambda m: (0, 0)),
        ]
        if n_hidden > 0:
            w_hid_p = _pad_axis(_pad_axis(w_hid, 1, H_p), 2, H_p)
            b_hid_p = _pad_axis(b_hid, 2, H_p)
            inputs += [w_hid_p, b_hid_p]
            in_specs += [
                _const_spec((n_hidden, H_p, H_p), lambda m: (0, 0, 0)),
                _const_spec((n_hidden, 1, H_p), lambda m: (0, 0, 0)),
            ]
        inputs += [w_out_p, b_out_p]
        in_specs += [
            _const_spec((H_p, Dout_p), lambda m: (0, 0)),
            _const_spec((1, Dout_p), lambda m: (0, 0)),
        ]
        out_spec = pl.BlockSpec((TM, Dout_p), lambda m: (m, 0))
        kernel = functools.partial(_mlp_kernel_resident, n_hidden=n_hidden)
        semantics = ("parallel",)
    else:
        # Stream hidden layers: grid axis 1 = [input, hidden_0..hidden_{n-1}, output].
        grid = (B_p // TM, n_hidden + 2)
        last_hid = n_hidden - 1

        def hid_map(m, l):
            return (jnp.maximum(jnp.minimum(l - 1, last_hid), 0), 0, 0)

        w_hid_p = _pad_axis(_pad_axis(w_hid, 1, H_p), 2, H_p)
        b_hid_p = _pad_axis(b_hid, 2, H_p)
        inputs = [x_p, w_in_p, b_in_p, w_hid_p, b_hid_p, w_out_p, b_out_p]
        in_specs = [
            pl.BlockSpec((TM, Din_p), lambda m, l: (m, 0)),
            _const_spec((Din_p, H_p), lambda m, l: (0, 0)),
            _const_spec((1, H_p), lambda m, l: (0, 0)),
            pl.BlockSpec((1, H_p, H_p), hid_map),   # streamed (double-buffered)
            pl.BlockSpec((1, 1, H_p), hid_map),
            _const_spec((H_p, Dout_p), lambda m, l: (0, 0)),
            _const_spec((1, Dout_p), lambda m, l: (0, 0)),
        ]
        out_spec = pl.BlockSpec((TM, Dout_p), lambda m, l: (m, 0))
        kernel = _mlp_kernel_streamed
        semantics = ("parallel", "arbitrary")

    out = pl.pallas_call(
        kernel,
        out_shape=jax.ShapeDtypeStruct((B_p, Dout_p), out_dtype),
        grid=grid,
        in_specs=in_specs,
        out_specs=out_spec,
        scratch_shapes=[pltpu.VMEM((TM, H_p), cdt)],  # bf16 activation scratch
        compiler_params=pltpu.CompilerParams(
            dimension_semantics=semantics,
            vmem_limit_bytes=int(budget),
        ),
    )(*inputs)
    return out[:B, :Dout]


def init_mlp_params(key, input_size, hidden_size, output_size, n_layers,
                    dtype=jnp.bfloat16):
    """Params matching the PyTorch MLP: input layer, (n_layers-1) hidden layers,
    output layer. Weights stored [in, out], biases [1, out], bf16."""
    n_hidden = n_layers - 1

    def _linear(k, din, dout):
        kw, kb = jax.random.split(k)
        bound = float(din) ** -0.5  # PyTorch nn.Linear default init range
        w = jax.random.uniform(kw, (din, dout), jnp.float32, -bound, bound)
        b = jax.random.uniform(kb, (1, dout), jnp.float32, -bound, bound)
        return w.astype(dtype), b.astype(dtype)

    key, k_in, k_out = jax.random.split(key, 3)
    w_in, b_in = _linear(k_in, input_size, hidden_size)
    w_out, b_out = _linear(k_out, hidden_size, output_size)
    if n_hidden > 0:
        keys = jax.random.split(key, n_hidden)
        ws, bs = zip(*[_linear(k, hidden_size, hidden_size) for k in keys])
        w_hid = jnp.stack(ws)   # (n_hidden, H, H)
        b_hid = jnp.stack(bs)   # (n_hidden, 1, H)
    else:
        w_hid = b_hid = None
    return (w_in, b_in, w_hid, b_hid, w_out, b_out)


if __name__ == "__main__":
    # Small shapes consistent with the module; non-multiple-of-128 dims exercise
    # the padding path, batch=48 exercises multi-tile grids.
    batch = 48
    input_size, hidden_size, output_size, n_layers = 64, 96, 80, 3

    key = jax.random.PRNGKey(0)
    key, kx = jax.random.split(key)
    x = jax.random.normal(kx, (batch, input_size), jnp.float32)
    params = init_mlp_params(key, input_size, hidden_size, output_size, n_layers)

    # Plain-JAX reference using the same operand quantization (bf16 matmul
    # operands, f32 accumulation, f32 epilogue, bf16 re-rounding between layers).
    w_in, b_in, w_hid, b_hid, w_out, b_out = params
    layers = [(w_in, b_in)]
    if w_hid is not None:
        layers += [(w_hid[i], b_hid[i]) for i in range(w_hid.shape[0])]
    layers += [(w_out, b_out)]
    h = x.astype(w_in.dtype)
    ref = None
    for i, (w, b) in enumerate(layers):
        y = jnp.dot(h, w, preferred_element_type=jnp.float32) + b.astype(jnp.float32)
        if i < len(layers) - 1:
            h = jnp.maximum(y, 0.0).astype(w.dtype)
        ref = y

    # Default path (weights resident in VMEM).
    fwd = jax.jit(mlp_forward)
    out = jax.block_until_ready(fwd(x, params))
    assert out.shape == (batch, output_size) and out.dtype == jnp.float32
    err = float(jnp.max(jnp.abs(out - ref)))
    assert jnp.allclose(out, ref, atol=2e-2, rtol=2e-2), f"resident max err {err}"

    # Weight-streaming path (layer grid axis), used automatically for MLPs that
    # overflow the per-generation VMEM budget; forced here to validate it.
    fwd_s = jax.jit(functools.partial(mlp_forward, force_stream=True))
    out_s = jax.block_until_ready(fwd_s(x, params))
    err_s = float(jnp.max(jnp.abs(out_s - ref)))
    assert jnp.allclose(out_s, ref, atol=2e-2, rtol=2e-2), f"streamed max err {err_s}"

    print("KERNEL_OK")
</pallas_src>

<mosaic_0001>
module attributes {stable_mosaic.version = 11 : i64} {
  func.func @_mlp_kernel_resident(%arg0: i32, %arg1: memref<16x128xbf16, #tpu.memory_space<vmem>>, %arg2: memref<128x128xbf16, #tpu.memory_space<vmem>>, %arg3: memref<1x128xbf16, #tpu.memory_space<vmem>>, %arg4: memref<2x128x128xbf16, #tpu.memory_space<vmem>>, %arg5: memref<2x1x128xbf16, #tpu.memory_space<vmem>>, %arg6: memref<128x128xbf16, #tpu.memory_space<vmem>>, %arg7: memref<1x128xbf16, #tpu.memory_space<vmem>>, %arg8: memref<16x128xf32, #tpu.memory_space<vmem>>, %arg9: memref<16x128xbf16, #tpu.memory_space<vmem>>) attributes {dimension_semantics = [#tpu.dimension_semantics<parallel>], iteration_bounds = array<i64: 3>, scalar_prefetch = 0 : i64, scratch_operands = 1 : i64, tpu.core_type = #tpu.core_type<tc>, window_params = [{transform_indices = @transform_0, window_bounds = array<i64: 16, 128>}, {pipeline_mode = #tpu.pipeline_mode<synchronous>, transform_indices = @transform_1, window_bounds = array<i64: 128, 128>}, {pipeline_mode = #tpu.pipeline_mode<synchronous>, transform_indices = @transform_2, window_bounds = array<i64: 1, 128>}, {pipeline_mode = #tpu.pipeline_mode<synchronous>, transform_indices = @transform_3, window_bounds = array<i64: 2, 128, 128>}, {pipeline_mode = #tpu.pipeline_mode<synchronous>, transform_indices = @transform_4, window_bounds = array<i64: 2, 1, 128>}, {pipeline_mode = #tpu.pipeline_mode<synchronous>, transform_indices = @transform_5, window_bounds = array<i64: 128, 128>}, {pipeline_mode = #tpu.pipeline_mode<synchronous>, transform_indices = @transform_6, window_bounds = array<i64: 1, 128>}, {transform_indices = @transform_7, window_bounds = array<i64: 16, 128>}]} {
    %c0 = arith.constant 0 : index
    %c0_0 = arith.constant 0 : index
    %0 = vector.load %arg1[%c0, %c0_0] : memref<16x128xbf16, #tpu.memory_space<vmem>>, vector<16x128xbf16>
    %c0_1 = arith.constant 0 : index
    %c0_2 = arith.constant 0 : index
    %1 = vector.load %arg2[%c0_1, %c0_2] : memref<128x128xbf16, #tpu.memory_space<vmem>>, vector<128x128xbf16>
    %cst = arith.constant dense<0.000000e+00> : vector<16x128xf32>
    %2 = tpu.matmul %0, %1, %cst {dimension_numbers = #tpu.dot_dimension_numbers<[1], [0], [0], [1], [0, 0, 1, 1], [], []>} : vector<16x128xbf16>, vector<128x128xbf16>, vector<16x128xf32> -> vector<16x128xf32>
    %c0_3 = arith.constant 0 : index
    %c0_4 = arith.constant 0 : index
    %3 = vector.load %arg3[%c0_3, %c0_4] : memref<1x128xbf16, #tpu.memory_space<vmem>>, vector<1x128xbf16>
    %4 = arith.extf %3 : vector<1x128xbf16> to vector<1x128xf32>
    %5 = vector.broadcast %4 : vector<1x128xf32> to vector<16x128xf32>
    %6 = arith.addf %2, %5 : vector<16x128xf32>
    %cst_5 = arith.constant 0.000000e+00 : f32
    %7 = vector.broadcast %cst_5 : f32 to vector<16x128xf32>
    %8 = arith.maximumf %6, %7 : vector<16x128xf32>
    %9 = arith.truncf %8 : vector<16x128xf32> to vector<16x128xbf16>
    %c0_6 = arith.constant 0 : index
    %c0_7 = arith.constant 0 : index
    %10 = vector.load %arg9[%c0_6, %c0_7] : memref<16x128xbf16, #tpu.memory_space<vmem>>, vector<16x128xbf16>
    tpu.vector_store %arg9[%c0_6, %c0_7], %9 {strides = array<i32>} : memref<16x128xbf16, #tpu.memory_space<vmem>>, vector<16x128xbf16>,
    %c0_8 = arith.constant 0 : index
    %c0_9 = arith.constant 0 : index
    %11 = vector.load %arg9[%c0_8, %c0_9] : memref<16x128xbf16, #tpu.memory_space<vmem>>, vector<16x128xbf16>
    %c0_10 = arith.constant 0 : index
    %c0_11 = arith.constant 0 : index
    %c0_12 = arith.constant 0 : index
    %12 = vector.load %arg4[%c0_10, %c0_11, %c0_12] : memref<2x128x128xbf16, #tpu.memory_space<vmem>>, vector<1x128x128xbf16>
    %13 = vector.shape_cast %12 : vector<1x128x128xbf16> to vector<128x128xbf16>
    %cst_13 = arith.constant dense<0.000000e+00> : vector<16x128xf32>
    %14 = tpu.matmul %11, %13, %cst_13 {dimension_numbers = #tpu.dot_dimension_numbers<[1], [0], [0], [1], [0, 0, 1, 1], [], []>} : vector<16x128xbf16>, vector<128x128xbf16>, vector<16x128xf32> -> vector<16x128xf32>
    %c0_14 = arith.constant 0 : index
    %c0_15 = arith.constant 0 : index
    %c0_16 = arith.constant 0 : index
    %15 = vector.load %arg5[%c0_14, %c0_15, %c0_16] : memref<2x1x128xbf16, #tpu.memory_space<vmem>>, vector<1x1x128xbf16>
    %16 = vector.shape_cast %15 : vector<1x1x128xbf16> to vector<1x128xbf16>
    %17 = arith.extf %16 : vector<1x128xbf16> to vector<1x128xf32>
    %18 = vector.broadcast %17 : vector<1x128xf32> to vector<16x128xf32>
    %19 = arith.addf %14, %18 : vector<16x128xf32>
    %cst_17 = arith.constant 0.000000e+00 : f32
    %20 = vector.broadcast %cst_17 : f32 to vector<16x128xf32>
    %21 = arith.maximumf %19, %20 : vector<16x128xf32>
    %22 = arith.truncf %21 : vector<16x128xf32> to vector<16x128xbf16>
    %c0_18 = arith.constant 0 : index
    %c0_19 = arith.constant 0 : index
    %23 = vector.load %arg9[%c0_18, %c0_19] : memref<16x128xbf16, #tpu.memory_space<vmem>>, vector<16x128xbf16>
    tpu.vector_store %arg9[%c0_18, %c0_19], %22 {strides = array<i32>} : memref<16x128xbf16, #tpu.memory_space<vmem>>, vector<16x128xbf16>,
    %c0_20 = arith.constant 0 : index
    %c0_21 = arith.constant 0 : index
    %24 = vector.load %arg9[%c0_20, %c0_21] : memref<16x128xbf16, #tpu.memory_space<vmem>>, vector<16x128xbf16>
    %c1 = arith.constant 1 : index
    %c0_22 = arith.constant 0 : index
    %c0_23 = arith.constant 0 : index
    %25 = vector.load %arg4[%c1, %c0_22, %c0_23] : memref<2x128x128xbf16, #tpu.memory_space<vmem>>, vector<1x128x128xbf16>
    %26 = vector.shape_cast %25 : vector<1x128x128xbf16> to vector<128x128xbf16>
    %cst_24 = arith.constant dense<0.000000e+00> : vector<16x128xf32>
    %27 = tpu.matmul %24, %26, %cst_24 {dimension_numbers = #tpu.dot_dimension_numbers<[1], [0], [0], [1], [0, 0, 1, 1], [], []>} : vector<16x128xbf16>, vector<128x128xbf16>, vector<16x128xf32> -> vector<16x128xf32>
    %c1_25 = arith.constant 1 : index
    %c0_26 = arith.constant 0 : index
    %c0_27 = arith.constant 0 : index
    %28 = vector.load %arg5[%c1_25, %c0_26, %c0_27] : memref<2x1x128xbf16, #tpu.memory_space<vmem>>, vector<1x1x128xbf16>
    %29 = vector.shape_cast %28 : vector<1x1x128xbf16> to vector<1x128xbf16>
    %30 = arith.extf %29 : vector<1x128xbf16> to vector<1x128xf32>
    %31 = vector.broadcast %30 : vector<1x128xf32> to vector<16x128xf32>
    %32 = arith.addf %27, %31 : vector<16x128xf32>
    %cst_28 = arith.constant 0.000000e+00 : f32
    %33 = vector.broadcast %cst_28 : f32 to vector<16x128xf32>
    %34 = arith.maximumf %32, %33 : vector<16x128xf32>
    %35 = arith.truncf %34 : vector<16x128xf32> to vector<16x128xbf16>
    %c0_29 = arith.constant 0 : index
    %c0_30 = arith.constant 0 : index
    %36 = vector.load %arg9[%c0_29, %c0_30] : memref<16x128xbf16, #tpu.memory_space<vmem>>, vector<16x128xbf16>
    tpu.vector_store %arg9[%c0_29, %c0_30], %35 {strides = array<i32>} : memref<16x128xbf16, #tpu.memory_space<vmem>>, vector<16x128xbf16>,
    %c0_31 = arith.constant 0 : index
    %c0_32 = arith.constant 0 : index
    %37 = vector.load %arg9[%c0_31, %c0_32] : memref<16x128xbf16, #tpu.memory_space<vmem>>, vector<16x128xbf16>
    %c0_33 = arith.constant 0 : index
    %c0_34 = arith.constant 0 : index
    %38 = vector.load %arg6[%c0_33, %c0_34] : memref<128x128xbf16, #tpu.memory_space<vmem>>, vector<128x128xbf16>
    %cst_35 = arith.constant dense<0.000000e+00> : vector<16x128xf32>
    %39 = tpu.matmul %37, %38, %cst_35 {dimension_numbers = #tpu.dot_dimension_numbers<[1], [0], [0], [1], [0, 0, 1, 1], [], []>} : vector<16x128xbf16>, vector<128x128xbf16>, vector<16x128xf32> -> vector<16x128xf32>
    %c0_36 = arith.constant 0 : index
    %c0_37 = arith.constant 0 : index
    %40 = vector.load %arg7[%c0_36, %c0_37] : memref<1x128xbf16, #tpu.memory_space<vmem>>, vector<1x128xbf16>
    %41 = arith.extf %40 : vector<1x128xbf16> to vector<1x128xf32>
    %42 = vector.broadcast %41 : vector<1x128xf32> to vector<16x128xf32>
    %43 = arith.addf %39, %42 : vector<16x128xf32>
    %c0_38 = arith.constant 0 : index
    %c0_39 = arith.constant 0 : index
    %44 = vector.load %arg8[%c0_38, %c0_39] : memref<16x128xf32, #tpu.memory_space<vmem>>, vector<16x128xf32>
    tpu.vector_store %arg8[%c0_38, %c0_39], %43 {strides = array<i32>} : memref<16x128xf32, #tpu.memory_space<vmem>>, vector<16x128xf32>,
    return
  }
  func.func @transform_0(%arg0: i32) -> (i32, i32) {
    %c0_i32 = arith.constant 0 : i32
    %c0_i32_0 = arith.constant 0 : i32
    return %arg0, %c0_i32 : i32, i32
  }
  func.func @transform_1(%arg0: i32) -> (i32, i32) {
    %c0_i32 = arith.constant 0 : i32
    %c0_i32_0 = arith.constant 0 : i32
    %c0_i32_1 = arith.constant 0 : i32
    return %c0_i32, %c0_i32_0 : i32, i32
  }
  func.func @transform_2(%arg0: i32) -> (i32, i32) {
    %c0_i32 = arith.constant 0 : i32
    %c0_i32_0 = arith.constant 0 : i32
    %c0_i32_1 = arith.constant 0 : i32
    return %c0_i32, %c0_i32_0 : i32, i32
  }
  func.func @transform_3(%arg0: i32) -> (i32, i32, i32) {
    %c0_i32 = arith.constant 0 : i32
    %c0_i32_0 = arith.constant 0 : i32
    %c0_i32_1 = arith.constant 0 : i32
    %c0_i32_2 = arith.constant 0 : i32
    return %c0_i32, %c0_i32_0, %c0_i32_1 : i32, i32, i32
  }
  func.func @transform_4(%arg0: i32) -> (i32, i32, i32) {
    %c0_i32 = arith.constant 0 : i32
    %c0_i32_0 = arith.constant 0 : i32
    %c0_i32_1 = arith.constant 0 : i32
    %c0_i32_2 = arith.constant 0 : i32
    return %c0_i32, %c0_i32_0, %c0_i32_1 : i32, i32, i32
  }
  func.func @transform_5(%arg0: i32) -> (i32, i32) {
    %c0_i32 = arith.constant 0 : i32
    %c0_i32_0 = arith.constant 0 : i32
    %c0_i32_1 = arith.constant 0 : i32
    return %c0_i32, %c0_i32_0 : i32, i32
  }
  func.func @transform_6(%arg0: i32) -> (i32, i32) {
    %c0_i32 = arith.constant 0 : i32
    %c0_i32_0 = arith.constant 0 : i32
    %c0_i32_1 = arith.constant 0 : i32
    return %c0_i32, %c0_i32_0 : i32, i32
  }
  func.func @transform_7(%arg0: i32) -> (i32, i32) {
    %c0_i32 = arith.constant 0 : i32
    %c0_i32_0 = arith.constant 0 : i32
    return %arg0, %c0_i32 : i32, i32
  }
}

</mosaic_0001>

<bundles_post_ra>
// kernel: mlp_forward.1
= control target key start
LH: loop header
LB: loop body
LE: loop exit
PB: predicated region body
PF: predicated region fallthrough
CT: control target
= control target key end

     0   :  { %12 = vsyncpa [#allocation4], 0  ;;  %s1451_s0 = inlined_call_operand.vmem [shape: bf16[48,128], index: 0, kind: input, shape index: {}]   ;;  %s1452_s1 = inlined_call_operand.vmem [shape: bf16[128,128], index: 1, kind: input, shape index: {}]   ;;  %s1453_s2 = inlined_call_operand.vmem [shape: bf16[1,128], index: 2, kind: input, shape index: {}]   ;;  %s1454_s3 = inlined_call_operand.vmem [shape: bf16[2,128,128], index: 3, kind: input, shape index: {}]   ;;  %s1455_s4 = inlined_call_operand.vmem [shape: bf16[2,1,128], index: 4, kind: input, shape index: {}]   ;;  %s1456_s5 = inlined_call_operand.vmem [shape: bf16[128,128], index: 5, kind: input, shape index: {}]   ;;  %s1457_s6 = inlined_call_operand.vmem [shape: bf16[1,128], index: 6, kind: input, shape index: {}]   ;;  %s1458_s7 = inlined_call_operand.hbm [shape: f32[48,128], index: 7, kind: output, shape index: {}]  }
   0x1   :  { %14 = vsyncpa [#allocation4 + $0x1], 0  ;;  %s1192_s24 = smov 0   ;;  %s1194_s25 = smov 0  }
   0x2   :  { %s1196_s26 = smov 0   ;;  %s1198_s27 = smov 0  }
   0x3 LB: > { %s1213_s28 = sadd.s32 4294967295, %s1145_s27   ;;  %s828_s29 = sadd.s32 4294967294, %s1145_s27   ;;  %s1145_s27 = sphi %s1198_s27, %s1464_s27   ;;  %s1141_s26 = sphi %s1196_s26, %s1463_s26   ;;  %s1137_s25 = sphi %s1194_s25, %s1462_s25   ;;  %s1133_s24 = sphi %s1192_s24, %s1461_s24  }
   0x4   : > { %s1217_s30 = sadd.s32 1, %s1145_s27   ;;  %s179_s8 = sadd.s32 1, %s1141_s26 }
   0x5   : > { %s176_s9 = ssub.s32 %s1145_s27, %s1217_s30  ;;  %p189_p0 = scmp.ne.s32.totalorder %s1141_s26, %s1137_s25 }
   0x6   : > { %p177_p1 = scmp.eq.s32.totalorder %s176_s9, 0  ;;  %p190_p2 = scmp.eq.s32.totalorder %s1213_s28, 2 }
   0x7   : > { %p195_p3 = scmp.ne.s32.totalorder %s1137_s25, %s1133_s24  ;;  %p196_p4 = scmp.eq.s32.totalorder %s828_s29, 2 }
   0x8   : > { %s1228_s10 = scalar_select %p177_p1, %s1141_s26, %s179_s8  }
   0x9   : > { %p1230_p5 = por %p190_p2, %p189_p0  ;;  %p1234_p6 = por %p196_p4, %p195_p3 }
   0xa   : > { %p831_p7 = scmp.ge.s32.totalorder %s1145_s27, 1  ;;  %p241_p8 = scmp.lt.s32.totalorder %s1145_s27, 4 }
   0xc   : > { %p242_p9 = pnand %p831_p7, %p241_p8 }
   0xd   : > { %v1050_v0 = vld [vmem:[%s1452_s1] sm:$0xff] (!%p242_p9)   ;;  %v1147_v1 = vmov (!%p242_p9), 0.0   ;;  %v1051_v2 = vld [vmem:[%s1452_s1 + $0x8] sm:$0xff] (!%p242_p9)   ;;  %vm1148_vm0 = vmmov (!%p242_p9), 0   ;;  %s833_s17 = sshll.u32 (!%p242_p9), %s1213_s28, 1  ;;  %v1052_v3 = vld [vmem:[%s1452_s1 + $0x10] sm:$0xff] (!%p242_p9)   ;;  %v301_v24 = vlaneseq (!%p242_p9) }
   0xe   : > { %245 = sbr.rel (%p242_p9) target bundleno = 937 (0x3a9), region = 48  ;;  %927 = vmatprep.subr.bf16.mxu0 (!%p242_p9), %v1147_v1  ;;  %947 = vmatprep.subr.bf16.mxu1 (!%p242_p9), %v1147_v1  ;;  %p274_p10 = scmp.lt.s32.totalorder (!%p242_p9), %s833_s17, 5  ;;  %v1059_v4 = vld [vmem:[%s1454_s3] sm:$0xff] (!%p242_p9)   ;;  %v1053_v5 = vld [vmem:[%s1452_s1 + $0x18] sm:$0xff] (!%p242_p9)   ;;  %v1060_v6 = vld [vmem:[%s1454_s3 + $0x8] sm:$0xff] (!%p242_p9)  }
   0xf   : > { %928 = vmatpush3.bf16.msra.mxu0 (!%p242_p9), %v1050_v0  ;;  %943 = vmatprep.mubr.msk.bf16.mxu0 (!%p242_p9), %vm1148_vm0, %v1147_v1  ;;  %v1054_v7 = vld [vmem:[%s1452_s1 + $0x20] sm:$0xff] (!%p242_p9)   ;;  %v1061_v8 = vld [vmem:[%s1454_s3 + $0x10] sm:$0xff] (!%p242_p9)   ;;  %v1055_v9 = vld [vmem:[%s1452_s1 + $0x28] sm:$0xff] (!%p242_p9)   ;;  %v302_v25 = vshrl.u32 (!%p242_p9), %v301_v24, 7  ;;  %s270_s19 = sand.u32 (!%p242_p9), 1, %s1137_s25   ;;  %s890_s8 = sshll.u32 (!%p242_p9), %s1213_s28, 8 }
  0x10   : > { %929 = vmatprep.subr.bf16.mxu0 (!%p242_p9), %v1147_v1  ;;  %963 = vmatprep.mubr.msk.bf16.mxu1 (!%p242_p9), %vm1148_vm0, %v1147_v1  ;;  %v1062_v10 = vld [vmem:[%s1454_s3 + $0x18] sm:$0xff] (!%p242_p9)   ;;  %v1056_v11 = vld [vmem:[%s1452_s1 + $0x30] sm:$0xff] (!%p242_p9)   ;;  %v1063_v12 = vld [vmem:[%s1454_s3 + $0x20] sm:$0xff] (!%p242_p9)   ;;  %s832_s22 = sshll.u32 (!%p242_p9), %s270_s19, 4  ;;  %s1408_s14 = scalar_lea.hbm (!%p242_p9), %s1458_s7, %s890_s8 }
  0x11   : > { %948 = vmatpush3.bf16.msra.mxu1 (!%p242_p9), %v1059_v4  ;;  %v1057_v13 = vld [vmem:[%s1452_s1 + $0x38] sm:$0xff] (!%p242_p9)   ;;  %v1064_v14 = vld [vmem:[%s1454_s3 + $0x28] sm:$0xff] (!%p242_p9)   ;;  %v1065_v16 = vld [vmem:[%s1454_s3 + $0x30] sm:$0xff] (!%p242_p9)   ;;  %v1346_v28 = vsub.s32 (!%p242_p9), 0, %v302_v25  ;;  %s1410_s15 = scalar_lea.sflag (!%p242_p9), [#allocation4], %s270_s19  ;;  %s1149_s16 = smov (!%p242_p9), [#allocation3]  }
  0x12   : > { %949 = vmatprep.subr.bf16.mxu1 (!%p242_p9), %v1147_v1  ;;  %v1066_v17 = vld [vmem:[%s1454_s3 + $0x38] sm:$0xff] (!%p242_p9)   ;;  %v1067_v18 = vld [vmem:[%s1454_s3 + $0x40] sm:$0xff] (!%p242_p9)   ;;  %v1068_v19 = vld [vmem:[%s1454_s3 + $0x48] sm:$0xff] (!%p242_p9)  }
  0x13   : > { %930 = vmatpush3.bf16.msra.mxu0 (!%p242_p9), %v1051_v2  ;;  %v1069_v20 = vld [vmem:[%s1454_s3 + $0x50] sm:$0xff] (!%p242_p9)   ;;  %v1070_v21 = vld [vmem:[%s1454_s3 + $0x58] sm:$0xff] (!%p242_p9)   ;;  %v1071_v22 = vld [vmem:[%s1454_s3 + $0x60] sm:$0xff] (!%p242_p9)  }
  0x14   : > { %931 = vmatprep.subr.bf16.mxu0 (!%p242_p9), %v1147_v1  ;;  %v1072_v23 = vld [vmem:[%s1454_s3 + $0x68] sm:$0xff] (!%p242_p9)   ;;  %v299_v26 = vld [vmem:[%s1453_s2] sm:$0x1] (!%p242_p9)  ;;  %v1073_v39 = vld [vmem:[%s1454_s3 + $0x70] sm:$0xff] (!%p242_p9)  }
  0x15   : > { %s1466_s17 = smov (!%p274_p10, %s833_s17), 5  ;;  %950 = vmatpush3.bf16.msra.mxu1 %v1060_v6  ;;  %v300_v27 = vunpack.c.l.bf16 %v299_v26  ;;  %v1074_v40 = vld [vmem:[%s1454_s3 + $0x78] sm:$0xff]   ;;  %v1075_v41 = vld [vmem:[%s1456_s5] sm:$0xff]   ;;  %v1076_v42 = vld [vmem:[%s1456_s5 + $0x8] sm:$0xff]  }
  0x16   : > { %s834_s20 = sshll.u32 %s1466_s17, 2  ;;  %951 = vmatprep.subr.bf16.mxu1 %v1147_v1  ;;  %v1077_v43 = vld [vmem:[%s1456_s5 + $0x10] sm:$0xff]   ;;  %v1078_v44 = vld [vmem:[%s1456_s5 + $0x18] sm:$0xff]   ;;  %v1079_v45 = vld [vmem:[%s1456_s5 + $0x20] sm:$0xff]   ;;  %s1087_s17 = sshll.u32 %s1149_s16, 4  ;;  %s1088_s17 = int_to_ptr.vmem [resolvable:$false] %s1087_s17 }
  0x17   : > { %s1261_s23 = scalar_lea.vmem %s1451_s0, %s834_s20  ;;  %932 = vmatpush3.bf16.msra.mxu0 %v1052_v3  ;;  %v304_v29 = vrot.slane %v300_v27, %v1346_v28  ;;  %v1080_v46 = vld [vmem:[%s1456_s5 + $0x28] sm:$0xff]   ;;  %v421_v47 = vld [vmem:[%s1455_s4] sm:$0x1]  ;;  %v1081_v59 = vld [vmem:[%s1456_s5 + $0x30] sm:$0xff]   ;;  %s1089_s18 = scalar_lea.vmem %s1088_s17, 512 }
  0x18   : > { %933 = vmatprep.subr.bf16.mxu0 %v1147_v1  ;;  %v1058_v15 = vld [vmem:[%s1261_s23] sm:$0xff]   ;;  %v422_v48 = vunpack.c.l.bf16 %v421_v47  ;;  %v1082_v60 = vld [vmem:[%s1456_s5 + $0x38] sm:$0xff]   ;;  %s272_s23 = scalar_lea.vmem [#allocation3], %s832_s22 }
  0x19   : > { %952 = vmatpush3.bf16.msra.mxu1 %v1061_v8  ;;  %v868_v61 = vld [vmem:[%s1455_s4 + $0x1] sm:$0x1]  ;;  %s766_s29 = sshll.u32 %s272_s23, 4  ;;  %s1403_s29 = int_to_ptr.vmem [resolvable:$true] %s766_s29 }
  0x1a   : > { %953 = vmatprep.subr.bf16.mxu1 %v1147_v1  ;;  %v426_v49 = vrot.slane %v422_v48, %v1346_v28  ;;  %v540_v62 = vunpack.c.l.bf16 %v868_v61  ;;  %s1083_s28 = scalar_lea.vmem %s1403_s29, 256  ;;  %p1090_p0 = scmp.lt.s32.totalorder %s1403_s29, %s1088_s17 }
  0x1b   : > { %934 = vmatpush3.bf16.msra.mxu0 %v1053_v5  ;;  %p1084_p11 = scmp.ne.s32.totalorder %s1403_s29, %s1083_s28  ;;  %p1091_p1 = scmp.lt.s32.totalorder %s1089_s18, %s1083_s28 }
  0x1c   : > { %935 = vmatprep.subr.bf16.mxu0 %v1147_v1  ;;  %v544_v63 = vrot.slane %v540_v62, %v1346_v28 }
  0x1d   : > { %954 = vmatpush3.bf16.msra.mxu1 %v1062_v10  ;;  %p1085_p12 = pnand %p1084_p11, %p1230_p5  ;;  %p1092_p2 = por %p1091_p1, %p1090_p0 }
  0x1e   : > { %955 = vmatprep.subr.bf16.mxu1 %v1147_v1 }
  0x1f   : > { %936 = vmatpush3.bf16.msra.mxu0 %v1054_v7  ;;  %p1086_p13 = pneg %p1085_p12 }
  0x20   : > { %937 = vmatprep.subr.bf16.mxu0 %v1147_v1 }
  0x21   : > { %956 = vmatpush3.bf16.msra.mxu1 %v1063_v12  ;;  %p1093_p3 = pnand %p1092_p2, %p1086_p13 }
  0x22   : > { %957 = vmatprep.subr.bf16.mxu1 %v1147_v1 }
  0x23   : > { %938 = vmatpush3.bf16.msra.mxu0 %v1055_v9  ;;  %v655_v9 = vld [vmem:[%s1457_s6] sm:$0x1] }
  0x24   : > { %939 = vmatprep.subr.bf16.mxu0 %v1147_v1  ;;  %v656_v10 = vunpack.c.l.bf16 %v655_v9 }
  0x25   : > { %958 = vmatpush3.bf16.msra.mxu1 %v1064_v14 }
  0x26   : > { %959 = vmatprep.subr.bf16.mxu1 %v1147_v1 }
  0x27   : > { %940 = vmatpush3.bf16.msra.mxu0 %v1056_v11  ;;  %v660_v11 = vrot.slane %v656_v10, %v1346_v28 }
  0x28   : > { %941 = vmatprep.subr.bf16.mxu0 %v1147_v1 }
  0x29   : > { %960 = vmatpush3.bf16.msra.mxu1 %v1065_v16 }
  0x2a   : > { %961 = vmatprep.subr.bf16.mxu1 %v1147_v1 }
  0x2b   : > { %942 = vmatpush3.bf16.msra.mxu0 %v1057_v13 }
  0x2c   : > { %967 = vmatprep.subr.bf16.mxu0 %v1147_v1 }
  0x2d   : > { %962 = vmatpush3.bf16.msra.mxu1 %v1066_v17 }
  0x2e   : > { %944 = vmatmul.mubr.bf16.vlgmr.msra.gmra.mrb[0].mxu0 %v1058_v15  ;;  %987 = vmatprep.subr.bf16.mxu1 %v1147_v1 }
  0x2f   : > { %983 = vmatprep.mubr.msk.bf16.mxu0 %vm1148_vm0, %v1147_v1  ;;  %968 = vmatpush3.bf16.msra.mxu0 %v1067_v18 }
  0x30   : > { %969 = vmatprep.subr.bf16.mxu0 %v1147_v1 }
  0x33   : > { %970 = vmatpush3.bf16.msra.mxu0 %v1068_v19 }
  0x34   : > { %971 = vmatprep.subr.bf16.mxu0 %v1147_v1 }
  0x37   : > { %972 = vmatpush3.bf16.msra.mxu0 %v1069_v20 }
  0x38   : > { %973 = vmatprep.subr.bf16.mxu0 %v1147_v1 }
  0x3b   : > { %974 = vmatpush3.bf16.msra.mxu0 %v1070_v21 }
  0x3c   : > { %975 = vmatprep.subr.bf16.mxu0 %v1147_v1 }
  0x3f   : > { %976 = vmatpush3.bf16.msra.mxu0 %v1071_v22 }
  0x40   : > { %977 = vmatprep.subr.bf16.mxu0 %v1147_v1 }
  0x43   : > { %978 = vmatpush3.bf16.msra.mxu0 %v1072_v23 }
  0x44   : > { %979 = vmatprep.subr.bf16.mxu0 %v1147_v1 }
  0x47   : > { %980 = vmatpush3.bf16.msra.mxu0 %v1073_v39 }
  0x48   : > { %981 = vmatprep.subr.bf16.mxu0 %v1147_v1 }
  0x4b   : > { %982 = vmatpush3.bf16.msra.mxu0 %v1074_v40 }
 0x101   : > { %v393_v30 = vpop.f32.mrb[0].mxu0 }
 0x102   : > { %v394_v31 = vadd.f32 %v393_v30, %v304_v29  ;;  %v945_v32 = vpop.f32.mrb[1].mxu0 }
 0x103   : > { %v396_v33 = vpop.f32.mrb[2].mxu0 }
 0x104   : > { %v397_v34 = vadd.f32 %v396_v33, %v304_v29  ;;  %v946_v35 = vpop.f32.mrb[3].mxu0  ;;  %v400_v36 = vmax.f32 %v394_v31, 0.0 }
 0x106   : > { %v401_v37 = vmax.f32 %v397_v34, 0.0 }
 0x108   : > { %v402_v38 = vpack.c.bf16 %v401_v37, %v400_v36 }
 0x10a   : > { %964 = vmatmul.mubr.bf16.vlgmr.msra.gmra.mrb[0].mxu1 %v402_v38 }
 0x10b   : > { %1003 = vmatprep.mubr.msk.bf16.mxu1 %vm1148_vm0, %v1147_v1  ;;  %988 = vmatpush3.bf16.msra.mxu1 %v1075_v41 }
 0x10c   : > { %989 = vmatprep.subr.bf16.mxu1 %v1147_v1 }
 0x10f   : > { %990 = vmatpush3.bf16.msra.mxu1 %v1076_v42 }
 0x110   : > { %991 = vmatprep.subr.bf16.mxu1 %v1147_v1 }
 0x113   : > { %992 = vmatpush3.bf16.msra.mxu1 %v1077_v43 }
 0x114   : > { %993 = vmatprep.subr.bf16.mxu1 %v1147_v1 }
 0x117   : > { %994 = vmatpush3.bf16.msra.mxu1 %v1078_v44 }
 0x118   : > { %995 = vmatprep.subr.bf16.mxu1 %v1147_v1 }
 0x11b   : > { %996 = vmatpush3.bf16.msra.mxu1 %v1079_v45 }
 0x11c   : > { %997 = vmatprep.subr.bf16.mxu1 %v1147_v1 }
 0x11f   : > { %998 = vmatpush3.bf16.msra.mxu1 %v1080_v46 }
 0x120   : > { %999 = vmatprep.subr.bf16.mxu1 %v1147_v1 }
 0x123   : > { %1000 = vmatpush3.bf16.msra.mxu1 %v1081_v59 }
 0x124   : > { %1001 = vmatprep.subr.bf16.mxu1 %v1147_v1 }
 0x127   : > { %1002 = vmatpush3.bf16.msra.mxu1 %v1082_v60 }
 0x1dd   : > { %v509_v50 = vpop.f32.mrb[0].mxu1 }
 0x1de   : > { %v510_v51 = vadd.f32 %v509_v50, %v426_v49  ;;  %v965_v52 = vpop.f32.mrb[1].mxu1 }
 0x1df   : > { %v512_v53 = vpop.f32.mrb[2].mxu1 }
 0x1e0   : > { %v513_v54 = vadd.f32 %v512_v53, %v426_v49  ;;  %v966_v55 = vpop.f32.mrb[3].mxu1  ;;  %v516_v56 = vmax.f32 %v510_v51, 0.0 }
 0x1e2   : > { %v517_v57 = vmax.f32 %v513_v54, 0.0 }
 0x1e4   : > { %v518_v58 = vpack.c.bf16 %v517_v57, %v516_v56 }
 0x1e6   : > { %984 = vmatmul.mubr.bf16.vlgmr.msra.gmra.mrb[4].mxu0 %v518_v58 }
 0x2b9   : > { %v627_v0 = vpop.f32.mrb[4].mxu0 }
 0x2ba   : > { %v628_v2 = vadd.f32 %v627_v0, %v544_v63  ;;  %v985_v3 = vpop.f32.mrb[5].mxu0 }
 0x2bb   : > { %v630_v4 = vpop.f32.mrb[6].mxu0 }
 0x2bc   : > { %v631_v5 = vadd.f32 %v630_v4, %v544_v63  ;;  %v986_v1 = vpop.f32.mrb[7].mxu0  ;;  %v634_v6 = vmax.f32 %v628_v2, 0.0 }
 0x2be   : > { %v635_v7 = vmax.f32 %v631_v5, 0.0 }
 0x2c0   : > { %v636_v8 = vpack.c.bf16 %v635_v7, %v634_v6 }
 0x2c2   : > { %1004 = vmatmul.mubr.bf16.vlgmr.msra.gmra.mrb[4].mxu1 %v636_v8 }
 0x395   : > { %v743_v12 = vpop.f32.mrb[4].mxu1 }
 0x396   : > { %v744_v13 = vadd.f32 %v743_v12, %v660_v11  ;;  %v1005_v14 = vpop.f32.mrb[5].mxu1 }
 0x397   : > { %v746_v15 = vpop.f32.mrb[6].mxu1 }
 0x398   : > { %750 = vst [vmem:[%s272_s23] sm:$0xff] %v744_v13  ;;  %v747_v16 = vadd.f32 %v746_v15, %v660_v11  ;;  %v1006_v17 = vpop.f32.mrb[7].mxu1 }
 0x39a   : > { %751 = vst [vmem:[%s272_s23 + $0x8] sm:$0xff] %v747_v16 }
 0x39b   : > { %1096 = shalt.err (!%p1093_p3)
}
 0x39c   : > { %s1097_s19 = scalar_lea.hbm %s1408_s14, 256  ;;  %s1101_s22 = scalar_lea.hbm %s1458_s7, 768 }
 0x39d   : > { %p1098_p4 = scmp.ne.s32.totalorder %s1408_s14, %s1097_s19  ;;  %p1102_p9 = scmp.lt.u32.totalorder %s1408_s14, %s1458_s7 }
 0x39e   : > { %p1103_p10 = scmp.lt.u32.totalorder %s1101_s22, %s1097_s19  ;;  %p1105_p12 = scmp.lt.u32.totalorder %s1097_s19, %s1408_s14 }
 0x39f   : > { %p1099_p7 = pnand %p1098_p4, %p1230_p5 }
 0x3a0   : > { %p1104_p11 = por %p1103_p10, %p1102_p9 }
 0x3a1   : > { %p1100_p8 = pneg %p1099_p7 }
 0x3a2   : > { %p1106_p13 = por %p1105_p12, %p1104_p11 }
 0x3a4   : > { %p1107_p0 = pnand %p1106_p13, %p1100_p8 }
 0x3a6   : > { %1110 = shalt.err (!%p1107_p0)
}
 0x3a7   : > { %s1150_s9 = smov 128   ;;  %s1151_s13 = smov 8  }
 0x3a8   : > { %1007 = dma.vmem_to_hbm [thread:$0]  (%p1230_p5), %s1403_s29, 256, %s1408_s14, %s1410_s15, %s1150_s9, %s1150_s9, %s1151_s13  }
 0x3a9 PF: > { %p1013_p1 = scmp.ge.s32.totalorder %s1145_s27, 2  ;;  %s781_s28 = sand.u32 1, %s1133_s24  }
 0x3aa   : > { %s782_s16 = scalar_lea.sflag [#allocation4], %s781_s28 }
 0x3ab   : > { %p1010_p2 = pnand %p1013_p1, %p1234_p6 }
 0x3ad   : > { %1128 = dma.done.wait (!%p1010_p2), %s782_s16, 256  }
 0x3ae   : > { %1130 = vsyncadd (!%p1010_p2), %s782_s16, 4294967040  ;;  %p17_p3 = scmp.ge.s32.totalorder %s1217_s30, 5   ;;  %s1461_s24 = smov %s1137_s25 }
 0x3af   : > { %s1462_s25 = smov %s1141_s26  ;;  %s1463_s26 = smov %s1228_s10 }
 0x3b0   : > { %s1464_s27 = smov %s1217_s30  ;;  %19 = sbr.rel (!%p17_p3) target bundleno = 3 (0x3), region = 85 }
 0x3b7   :  { %787 = vsyncpa [#allocation4], 1 }
 0x3b8   :  { %789 = vsyncpa [#allocation4 + $0x1], 1 }

</bundles_post_ra>
